<compile_context>
chip_gen: v7x
topology: tpu7x:2x2x1
jax: 0.10.0
libtpu: 0.0.40
codegen_flags: <defaults>
</compile_context>

<pallas_src>
import jax
import jax.numpy as jnp
from jax.experimental import pallas as pl
from jax.experimental.pallas import tpu as pltpu  # noqa: F401  (TPU backend)


def linear_kernel(x_ref, w_ref, b_ref, o_ref):
    # x_ref: (M, K); w_ref: (K, N) pre-transposed (MXU-native layout);
    # b_ref: (1, N). One matmul + bias add, stored directly at (M, N).
    o_ref[...] = (
        jnp.dot(x_ref[...], w_ref[...], preferred_element_type=jnp.float32)
        + b_ref[...]
    )


def prepare_params(w, b):
    """One-time parameter prep (hoisted out of the per-call hot path):
    transpose the PyTorch-layout weight (N, K) -> (K, N) so the kernel hits
    the MXU's native (M,K)x(K,N) layout with zero cross-lane transpose work,
    and reshape the bias to a (1, N) row for a clean VMEM tile."""
    w_t = jnp.asarray(w).T                # (K, N) = (100, 50)
    b_row = jnp.asarray(b).reshape(1, -1)  # (1, N) = (1, 50)
    return w_t, b_row


def linear_pallas(x, w_t, b_row):
    """y = x @ w.T + b as a single-block (gridless) Pallas kernel."""
    m, k = x.shape
    n = w_t.shape[1]
    cost = pl.CostEstimate(
        flops=2 * m * k * n,
        transcendentals=0,
        bytes_accessed=4 * (m * k + k * n + n + m * n),
    )
    return pl.pallas_call(
        linear_kernel,
        out_shape=jax.ShapeDtypeStruct((m, n), jnp.float32),
        in_specs=[
            pl.BlockSpec((m, k), lambda: (0, 0)),   # x   (10, 100) full block
            pl.BlockSpec((k, n), lambda: (0, 0)),   # w^T (100, 50) full block
            pl.BlockSpec((1, n), lambda: (0, 0)),   # b   (1, 50)   full block
        ],
        out_specs=pl.BlockSpec((m, n), lambda: (0, 0)),  # y (10, 50), no slice
        cost_estimate=cost,
    )(x, w_t, b_row)


@jax.jit
def model_forward(x, w_t, b_row):
    y = linear_pallas(x, w_t, b_row)   # (10, 50)
    # TODO(synk): the PyTorch module then does stack+cat (4 identical copies
    # of y on a size-4 dim) and indexes x[15], which raises IndexError; since
    # every slice of that stack equals y, we return y directly.
    return y


if __name__ == "__main__":
    key = jax.random.PRNGKey(0)
    kx, kw, kb = jax.random.split(key, 3)

    # Inputs / parameters matching nn.Linear(100, 50) with x: (10, 100).
    x = jax.random.normal(kx, (10, 100), dtype=jnp.float32)
    bound = 1.0 / jnp.sqrt(100.0)
    w = jax.random.uniform(kw, (50, 100), minval=-bound, maxval=bound,
                           dtype=jnp.float32)
    b = jax.random.uniform(kb, (50,), minval=-bound, maxval=bound,
                           dtype=jnp.float32)

    # One-time parameter preparation (outside the hot path).
    w_t, b_row = prepare_params(w, b)

    out = model_forward(x, w_t, b_row)
    out = jax.block_until_ready(out)

    # Sanity check against plain-JAX reference.
    ref = x @ w.T + b
    assert out.shape == (10, 50)
    assert jnp.allclose(out, ref, atol=1e-5, rtol=1e-5)

    print("KERNEL_OK")
</pallas_src>

<mosaic_0001>
module attributes {stable_mosaic.version = 11 : i64} {
  func.func @linear_kernel(%arg0: memref<10x100xf32, #tpu.memory_space<vmem>>, %arg1: memref<100x50xf32, #tpu.memory_space<vmem>>, %arg2: memref<1x50xf32, #tpu.memory_space<vmem>>, %arg3: memref<10x50xf32, #tpu.memory_space<vmem>>) attributes {dimension_semantics = [], scalar_prefetch = 0 : i64, scratch_operands = 0 : i64, tpu.core_type = #tpu.core_type<tc>} {
    %c0 = arith.constant 0 : index
    %c0_0 = arith.constant 0 : index
    %0 = vector.load %arg0[%c0, %c0_0] : memref<10x100xf32, #tpu.memory_space<vmem>>, vector<10x100xf32>
    %c0_1 = arith.constant 0 : index
    %c0_2 = arith.constant 0 : index
    %1 = vector.load %arg1[%c0_1, %c0_2] : memref<100x50xf32, #tpu.memory_space<vmem>>, vector<100x50xf32>
    %cst = arith.constant dense<0.000000e+00> : vector<10x50xf32>
    %2 = tpu.matmul %0, %1, %cst {dimension_numbers = #tpu.dot_dimension_numbers<[1], [0], [0], [1], [0, 0, 1, 1], [], []>} : vector<10x100xf32>, vector<100x50xf32>, vector<10x50xf32> -> vector<10x50xf32>
    %c0_3 = arith.constant 0 : index
    %c0_4 = arith.constant 0 : index
    %3 = vector.load %arg2[%c0_3, %c0_4] : memref<1x50xf32, #tpu.memory_space<vmem>>, vector<1x50xf32>
    %4 = vector.broadcast %3 : vector<1x50xf32> to vector<10x50xf32>
    %5 = arith.addf %2, %4 : vector<10x50xf32>
    %c0_5 = arith.constant 0 : index
    %c0_6 = arith.constant 0 : index
    %6 = vector.load %arg3[%c0_5, %c0_6] : memref<10x50xf32, #tpu.memory_space<vmem>>, vector<10x50xf32>
    tpu.vector_store %arg3[%c0_5, %c0_6], %5 {strides = array<i32>} : memref<10x50xf32, #tpu.memory_space<vmem>>, vector<10x50xf32>,
    return
  }
}

</mosaic_0001>

<bundles_post_ra>
// kernel: model_forward.1
= control target key start
LH: loop header
LB: loop body
LE: loop exit
PB: predicated region body
PF: predicated region fallthrough
CT: control target
= control target key end

     0   :  { %vm37_vm0 = vcmask 818176   ;;  %s327_s0 = inlined_call_operand.vmem [shape: f32[10,100], index: 0, kind: input, shape index: {}]   ;;  %s328_s1 = inlined_call_operand.vmem [shape: f32[100,50], index: 1, kind: input, shape index: {}]   ;;  %s329_s2 = inlined_call_operand.vmem [shape: f32[1,50], index: 2, kind: input, shape index: {}]   ;;  %s330_s3 = inlined_call_operand.hbm [shape: f32[10,50], index: 3, kind: output, shape index: {}]  }
   0x1   :  { %v17_v0 = vld [vmem:[%s328_s1] sm:$0xff]  ;;  %v18_v1 = vld [vmem:[%s328_s1 + $0x8] sm:$0xff]  ;;  %v19_v2 = vld [vmem:[%s328_s1 + $0x10] sm:$0xff] }
   0x2   :  { %v191_v3 = vpack.c.bf16 %v18_v1, %v17_v0  ;;  %v20_v4 = vld [vmem:[%s328_s1 + $0x18] sm:$0xff]  ;;  %v21_v6 = vld [vmem:[%s328_s1 + $0x20] sm:$0xff]  ;;  %v22_v7 = vld [vmem:[%s328_s1 + $0x28] sm:$0xff] }
   0x3   :  { %v195_v5 = vpack.c.bf16 %v20_v4, %v19_v2  ;;  %v15_v8 = vld [vmem:[%s327_s0] sm:$0xff]  ;;  %v199_v9 = vpack.c.bf16 %v22_v7, %v21_v6 }
   0x4   :  { %192 = vmatprep.subr.bf16.mxu0 %v191_v3  ;;  %188 = vmatprep.mubr.msk.f32.mxu0 %vm37_vm0, %v15_v8 }
   0x5   :  { %194 = vmatpush3.bf16.msra.mxu0 %v191_v3 }
   0x6   :  { %196 = vmatprep.subr.bf16.mxu0 %v195_v5 }
   0x7   :  { %8 = vsyncpa [#allocation3], 0  ;;  %v23_v10 = vld [vmem:[%s328_s1 + $0x30] sm:$0xff]  ;;  %v24_v11 = vld [vmem:[%s328_s1 + $0x38] sm:$0xff]  ;;  %vm44_vm1 = vcmask 1043456   ;;  %s242_s17 = smov [#allocation2]  }
   0x8   :  { %v203_v12 = vpack.c.bf16 %v24_v11, %v23_v10  ;;  %v25_v13 = vld [vmem:[%s328_s1 + $0x40] sm:$0xff]  ;;  %v26_v14 = vld [vmem:[%s328_s1 + $0x48] sm:$0xff]  ;;  %v27_v16 = vld [vmem:[%s328_s1 + $0x50] sm:$0xff]  ;;  %s132_s18 = sshll.u32 %s242_s17, 4  ;;  %vm125_vm2 = vcmask 402432   ;;  %vm123_vm3 = vcmask 408576   ;;  %s133_s18 = int_to_ptr.vmem [resolvable:$true] %s132_s18 }
   0x9   :  { %198 = vmatpush3.bf16.msra.mxu0 %v195_v5  ;;  %v207_v15 = vpack.c.bf16 %v26_v14, %v25_v13  ;;  %v28_v17 = vld [vmem:[%s328_s1 + $0x58] sm:$0xff]  ;;  %v29_v19 = vld [vmem:[%s328_s1 + $0x60] sm:$0xf]  ;;  %v16_v20 = vld [vmem:[%s327_s0 + $0x8] sm:$0x3]  ;;  %s218_s1 = scalar_lea.vmem %s133_s18, 256  ;;  %p223_p1 = scmp.lt.s32.totalorder %s133_s18, %s133_s18 }
   0xa   :  { %200 = vmatprep.subr.bf16.mxu0 %v199_v9  ;;  %v211_v18 = vpack.c.bf16 %v28_v17, %v27_v16  ;;  %v143_v21 = vld [vmem:[%s329_s2] ss:$0 sm:$0xff]  ;;  %p219_p0 = scmp.ne.s32.totalorder %s133_s18, %s218_s1  ;;  %p224_p2 = scmp.lt.s32.totalorder %s218_s1, %s218_s1 }
   0xc   :  { %p225_p3 = por %p224_p2, %p223_p1 }
   0xd   :  { %202 = vmatpush3.bf16.msra.mxu0 %v199_v9 }
   0xe   :  { %204 = vmatprep.subr.bf16.mxu0 %v203_v12  ;;  %p226_p4 = pnand %p225_p3, %p219_p0 }
  0x11   :  { %206 = vmatpush3.bf16.msra.mxu0 %v203_v12 }
  0x12   :  { %208 = vmatprep.subr.bf16.mxu0 %v207_v15 }
  0x15   :  { %210 = vmatpush3.bf16.msra.mxu0 %v207_v15 }
  0x16   :  { %212 = vmatprep.subr.bf16.mxu0 %v211_v18 }
  0x19   :  { %214 = vmatpush3.bf16.msra.mxu0 %v211_v18 }
  0x1a   :  { %186 = vmatprep.subr.msk.mxu0 %vm44_vm1, %v29_v19 }
  0x1d   :  { %187 = vmatpush3.msk.msra.mxu0 %vm44_vm1, %v29_v19 }
  0x1e   :  { %189 = vmatmul.mubr.msk.f32.vlgmr.msra.gmra.mrb[0].mxu0 %vm37_vm0, %v16_v20 }
  0xf1   :  { %v190_v22 = vpop.f32.mrb[0].mxu0 }
  0xf2   :  { %v120_v23 = vadd.f32 %v190_v22, %v143_v21  ;;  %v114_v24 = vpop.f32.mrb[1].mxu0 }
  0xf3   :  { %v115_v25 = vadd.f32 %v143_v21, %v114_v24 }
  0xf4   :  { %126 = vst.msk [vmem:[#allocation2 + $0x8] sm:$0x3] %vm125_vm2, %v120_v23 }
  0xf5   :  { %124 = vst.msk [vmem:[#allocation2] sm:$0xff] %vm123_vm3, %v115_v25 }
  0xf6   :  { %229 = shalt.err (!%p226_p4)
}
  0xf7   :  { %s230_s19 = scalar_lea.hbm %s330_s3, 256 }
  0xf8   :  { %p231_p5 = scmp.ne.s32.totalorder %s330_s3, %s230_s19  ;;  %p234_p6 = scmp.lt.u32.totalorder %s230_s19, %s330_s3 }
  0xfa   :  { %p236_p7 = pnand %p234_p6, %p231_p5 }
  0xfc   :  { %239 = shalt.err (!%p236_p7)
}
  0xfd   :  { %s243_s24 = smov 128   ;;  %s244_s25 = smov 8  }
  0xfe   :  { %138 = dma.vmem_to_hbm [thread:$0]  %s133_s18, 256, %s330_s3, [#allocation3], %s243_s24, %s243_s24, %s244_s25  }
  0xff   :  { %240 = dma.done.wait [#allocation3], 256  }
 0x100   :  { %241 = vsyncadd [#allocation3], 4294967040 }
 0x101   :  { %142 = vsyncpa [#allocation3], 1 }

</bundles_post_ra>
